<compile_context>
chip_gen: v5e
topology: v5e:2x2
jax: 0.10.0
libtpu: 0.0.40
codegen_flags: <defaults>
</compile_context>

<pallas_src>
import math

import jax
import jax.numpy as jnp
from jax.experimental import pallas as pl
from jax.experimental.pallas import tpu as pltpu

_A = math.sqrt(2.0 / math.pi)
# NOTE: the source module uses 0.004715 (not the standard 0.044715);
# reproduced deliberately to match the PyTorch forward pass.
_B = _A * 0.004715


def _gelu_kernel(x_ref, o_ref):
    x = x_ref[...].astype(jnp.float32)
    inner = x * (jnp.float32(_A) + jnp.float32(_B) * (x * x))   # = A*x + A*0.004715*x^3
    y = jnp.float32(0.5) * x * (jnp.float32(1.0) + jnp.tanh(inner))
    o_ref[...] = y.astype(o_ref.dtype)


def _gelu_jnp(x):
    """Tiny-tail / reference path, identical math to the module."""
    xf = x.astype(jnp.float32)
    y = 0.5 * xf * (1.0 + jnp.tanh(jnp.float32(_A) * (xf + 0.004715 * xf ** 3)))
    return y.astype(x.dtype)


def _sublane_multiple(dtype) -> int:
    # 8 for 4-byte dtypes, 16 for 2-byte (bf16), 32 for 1-byte dtypes.
    return max(8, 32 // jnp.dtype(dtype).itemsize)


def _default_block_bytes() -> int:
    """Per-generation tile byte budget (resident VMEM = 4x this)."""
    try:
        kind = jax.devices()[0].device_kind.lower()
    except Exception:  # pragma: no cover
        return 4 * 1024 * 1024
    if "v7" in kind:
        return 8 * 1024 * 1024   # 32 MiB resident, under v7x's 64 MiB physical VMEM
    if "v5" in kind:
        return 3 * 1024 * 1024   # 12 MiB resident, under v5e's 16 MiB scoped default
    return 6 * 1024 * 1024       # v6e & friends: 24 MiB resident


def _pick_tile(rows: int, sub: int, budget_rows: int) -> int:
    """Sublane-aligned row tile; small grids get an even step count (v7x TCs)."""
    if rows <= sub:
        return rows  # block == full array extent (allowed)
    tile = max(sub, (min(budget_rows, rows) // sub) * sub)
    steps = -(-rows // tile)
    if steps < 8:
        steps = max(2, steps + (steps & 1))          # round up to even
        per = -(-rows // steps)
        tile = max(sub, -(-per // sub) * sub)        # ceil to sublane multiple
    return tile


def gelu_pallas(x: jax.Array, *, block_bytes: int | None = None) -> jax.Array:
    """GELU(x) = 0.5*x*(1 + tanh(sqrt(2/pi)*(x + 0.004715*x^3))) (module's exact formula)."""
    orig_shape = x.shape
    dtype = x.dtype
    n = x.size
    if n == 0:
        return x

    if block_bytes is None:
        block_bytes = _default_block_bytes()
    itemsize = jnp.dtype(dtype).itemsize
    sub = _sublane_multiple(dtype)

    # ---- lane-dense layout: bulk (multiple of 128) + tiny tail ------------
    if n < 128:
        lane, rows, bulk, tail = n, 1, n, 0
    else:
        bulk = (n // 128) * 128
        tail = n - bulk
        lane = next(c for c in (1024, 512, 256, 128) if bulk % c == 0)
        rows = bulk // lane

    xf = x.reshape(-1)
    x_bulk = (xf[:bulk] if tail else xf).reshape(rows, lane)

    # ---- byte-budgeted, sublane-aligned row tile ---------------------------
    budget_rows = max(1, block_bytes // (lane * itemsize))
    tile = _pick_tile(rows, sub, budget_rows)
    grid = (pl.cdiv(rows, tile),)

    resident = 4 * tile * lane * itemsize               # 2 bufs x (in + out)
    vmem_limit = resident + (8 << 20)                   # headroom; <= 40 MiB by construction

    bulk_out = pl.pallas_call(
        _gelu_kernel,
        out_shape=jax.ShapeDtypeStruct((rows, lane), dtype),
        grid_spec=pltpu.PrefetchScalarGridSpec(
            num_scalar_prefetch=0,
            grid=grid,
            in_specs=[pl.BlockSpec((tile, lane), lambda i: (i, 0))],
            out_specs=pl.BlockSpec((tile, lane), lambda i: (i, 0)),
        ),
        compiler_params=pltpu.CompilerParams(
            dimension_semantics=("parallel",),
            vmem_limit_bytes=vmem_limit,
        ),
    )(x_bulk)

    if tail:
        tail_out = _gelu_jnp(xf[bulk:])                 # <128 elements, negligible
        return jnp.concatenate([bulk_out.reshape(-1), tail_out]).reshape(orig_shape)
    return bulk_out.reshape(orig_shape)


def gelu_ref(x: jax.Array) -> jax.Array:
    xf = x.astype(jnp.float32)
    return (0.5 * xf * (1.0 + jnp.tanh(jnp.sqrt(2.0 / jnp.pi)
                                       * (xf + 0.004715 * xf ** 3)))).astype(x.dtype)


if __name__ == "__main__":
    gelu = jax.jit(gelu_pallas)

    # Small GPT-like activation shape: (batch=2, seq=8, hidden=32)
    x = jax.random.normal(jax.random.PRNGKey(0), (2, 8, 32), dtype=jnp.float32)
    y = jax.block_until_ready(gelu(x))
    assert y.shape == x.shape and y.dtype == x.dtype
    assert jnp.allclose(y, gelu_ref(x), atol=1e-5, rtol=1e-5)

    # Shape whose element count is NOT a multiple of 128 -> bulk + jnp tail path.
    x2 = jax.random.normal(jax.random.PRNGKey(1), (3, 5, 96), dtype=jnp.float32)
    y2 = jax.block_until_ready(gelu(x2))
    assert jnp.allclose(y2, gelu_ref(x2), atol=1e-5, rtol=1e-5)

    # bf16 I/O (internal compute stays f32) -> halves HBM traffic for callers.
    x3 = jax.random.normal(jax.random.PRNGKey(2), (2, 8, 256), dtype=jnp.bfloat16)
    y3 = jax.block_until_ready(gelu(x3))
    assert y3.dtype == jnp.bfloat16
    assert jnp.allclose(y3.astype(jnp.float32), gelu_ref(x3).astype(jnp.float32),
                        atol=2e-2, rtol=2e-2)

    print("KERNEL_OK")
</pallas_src>

<mosaic_0001>
module attributes {stable_mosaic.version = 11 : i64} {
  func.func @_gelu_kernel(%arg0: i32, %arg1: memref<1x512xf32, #tpu.memory_space<vmem>>, %arg2: memref<1x512xf32, #tpu.memory_space<vmem>>) attributes {dimension_semantics = [#tpu.dimension_semantics<parallel>], iteration_bounds = array<i64: 1>, scalar_prefetch = 0 : i64, scratch_operands = 0 : i64, tpu.core_type = #tpu.core_type<tc>, window_params = [{transform_indices = @transform_0, window_bounds = array<i64: 1, 512>}, {transform_indices = @transform_1, window_bounds = array<i64: 1, 512>}]} {
    %c0 = arith.constant 0 : index
    %c0_0 = arith.constant 0 : index
    %0 = vector.load %arg1[%c0, %c0_0] : memref<1x512xf32, #tpu.memory_space<vmem>>, vector<1x512xf32>
    %1 = arith.mulf %0, %0 : vector<1x512xf32>
    %cst = arith.constant 0.00376202562 : f32
    %2 = vector.broadcast %cst : f32 to vector<1x512xf32>
    %3 = arith.mulf %2, %1 : vector<1x512xf32>
    %cst_1 = arith.constant 0.797884583 : f32
    %4 = vector.broadcast %cst_1 : f32 to vector<1x512xf32>
    %5 = arith.addf %4, %3 : vector<1x512xf32>
    %6 = arith.mulf %0, %5 : vector<1x512xf32>
    %cst_2 = arith.constant 5.000000e-01 : f32
    %7 = vector.broadcast %cst_2 : f32 to vector<1x512xf32>
    %8 = arith.mulf %7, %0 : vector<1x512xf32>
    %9 = math.tanh %6 : vector<1x512xf32>
    %cst_3 = arith.constant 1.000000e+00 : f32
    %10 = vector.broadcast %cst_3 : f32 to vector<1x512xf32>
    %11 = arith.addf %10, %9 : vector<1x512xf32>
    %12 = arith.mulf %8, %11 : vector<1x512xf32>
    %c0_4 = arith.constant 0 : index
    %c0_5 = arith.constant 0 : index
    %13 = vector.load %arg2[%c0_4, %c0_5] : memref<1x512xf32, #tpu.memory_space<vmem>>, vector<1x512xf32>
    tpu.vector_store %arg2[%c0_4, %c0_5], %12 {strides = array<i32>} : memref<1x512xf32, #tpu.memory_space<vmem>>, vector<1x512xf32>,
    return
  }
  func.func @transform_0(%arg0: i32) -> (i32, i32) {
    %c0_i32 = arith.constant 0 : i32
    %c0_i32_0 = arith.constant 0 : i32
    return %arg0, %c0_i32 : i32, i32
  }
  func.func @transform_1(%arg0: i32) -> (i32, i32) {
    %c0_i32 = arith.constant 0 : i32
    %c0_i32_0 = arith.constant 0 : i32
    return %arg0, %c0_i32 : i32, i32
  }
}

</mosaic_0001>

<bundles_post_ra>
// kernel: gelu_pallas.1
= control target key start
LH: loop header
LB: loop body
LE: loop exit
PB: predicated region body
PF: predicated region fallthrough
CT: control target
= control target key end

     0   :  { %v17_v5 = vlaneseq  ;;  %s44_s0 = inlined_call_operand.vmem [shape: f32[1,512], index: 0, kind: input, shape index: {}]   ;;  %s45_s1 = inlined_call_operand.vmem [shape: f32[1,512], index: 1, kind: output, shape index: {}]  }
   0x1   :  { %v8_v0 = vld [vmem:[%s44_s0] sm:$0xf] }
   0x2   :  { %v9_v1 = vmul.f32 %v8_v0, %v8_v0  ;;  %v13_v6 = vmul.f32 0.5, %v8_v0  ;;  %vm19_vm0 = vcmp.lt.s32.totalorder %v17_v5, 512 }
   0x4   :  { %v10_v2 = vmul.f32 0.0037620256, %v9_v1 }
   0x6   :  { %v11_v3 = vadd.f32 0.7978846, %v10_v2 }
   0x8   :  { %v12_v4 = vmul.f32 %v11_v3, %v8_v0 }
   0xa   :  { %26 = vtanh.f32 %v12_v4 }
  0x10   :  { %v27_v7 = vpop.eup %26 }
  0x11   :  { %v15_v8 = vadd.f32 1.0, %v27_v7 }
  0x13   :  { %v16_v9 = vmul.f32 %v15_v8, %v13_v6 }
  0x15   :  { %21 = vst.msk [vmem:[%s45_s1] sm:$0xf] %vm19_vm0, %v16_v9 }

</bundles_post_ra>
